<compile_context>
chip_gen: v5e
topology: v5e:2x2
jax: 0.10.0
libtpu: 0.0.40
codegen_flags: <defaults>
</compile_context>

<pallas_src>
import functools

import jax
import jax.numpy as jnp
from jax.experimental import pallas as pl
from jax.experimental.pallas import tpu as pltpu

LANE = 128      # lane width of a vreg
SUBLANE = 8     # f32 sublane count


def _round_up(n, m):
    return ((n + m - 1) // m) * m


def mlp_kernel(x_ref, w1_ref, b1_ref, w2_ref, b2_ref, w3_ref, b3_ref, o_ref):
    # Layer 1: Linear + ReLU (MXU matmul, f32 accumulation, f32 epilogue).
    # jnp.dot promotes mixed (f32 x, bf16 w) operands; accumulation stays f32.
    h = jnp.dot(x_ref[...], w1_ref[...], preferred_element_type=jnp.float32)
    h = jnp.maximum(h + b1_ref[...], 0.0)
    # Layer 2: Linear + ReLU.
    h = jnp.dot(h, w2_ref[...], preferred_element_type=jnp.float32)
    h = jnp.maximum(h + b2_ref[...], 0.0)
    # Output layer: Linear (no activation).
    o = jnp.dot(h, w3_ref[...], preferred_element_type=jnp.float32)
    o_ref[...] = (o + b3_ref[...]).astype(o_ref.dtype)


def prepare_params(params, *, weight_dtype=jnp.float32):
    """Pad weights/biases to lane-dense shapes.  Run ONCE, outside the jit.

    `params` holds already-transposed weights w{i}: [in, out] and biases b{i}: [out].
    The input dim of w1 (784) is NOT padded (x is read unpadded); hidden and output
    dims are zero-padded to multiples of 128 so every matmul N-dim and the output
    store are lane-dense.  Zero padding keeps padded lanes exactly zero through
    bias-add / ReLU, so nothing leaks downstream.
    """
    w1, b1 = params["w1"], params["b1"]
    w2, b2 = params["w2"], params["b2"]
    w3, b3 = params["w3"], params["b3"]
    h1, h2, out = w1.shape[1], w2.shape[1], w3.shape[1]
    h1p, h2p, outp = (_round_up(d, LANE) for d in (h1, h2, out))
    return {
        "w1": jnp.pad(w1, ((0, 0), (0, h1p - h1))).astype(weight_dtype),
        "b1": jnp.pad(b1.reshape(1, -1), ((0, 0), (0, h1p - h1))).astype(jnp.float32),
        "w2": jnp.pad(w2, ((0, h1p - h1), (0, h2p - h2))).astype(weight_dtype),
        "b2": jnp.pad(b2.reshape(1, -1), ((0, 0), (0, h2p - h2))).astype(jnp.float32),
        "w3": jnp.pad(w3, ((0, h2p - h2), (0, outp - out))).astype(weight_dtype),
        "b3": jnp.pad(b3.reshape(1, -1), ((0, 0), (0, outp - out))).astype(jnp.float32),
    }


@functools.partial(jax.jit, static_argnames=("out_features", "block_b"))
def mlp_forward(x, prepared, *, out_features=10, block_b=512):
    """x: NCHW float array. prepared: output of prepare_params (padded weights)."""
    w1p, b1p = prepared["w1"], prepared["b1"]
    w2p, b2p = prepared["w2"], prepared["b2"]
    w3p, b3p = prepared["w3"], prepared["b3"]

    B = x.shape[0]
    x2d = x.reshape(B, -1)                       # nn.Flatten() (free reshape, no copy)
    if x2d.dtype not in (jnp.float32, jnp.bfloat16):
        x2d = x2d.astype(jnp.float32)
    in_f = x2d.shape[1]
    assert in_f == w1p.shape[0], (in_f, w1p.shape)
    h1p, h2p, outp = w1p.shape[1], w2p.shape[1], w3p.shape[1]

    # Batch tile: multiple of 8 sublanes, capped by block_b.  The trailing grid
    # block may over-extend past B: out-of-bounds rows read unspecified data but
    # only touch their own output rows, which are dropped on write.
    tb = min(_round_up(block_b, SUBLANE), _round_up(B, SUBLANE))
    grid = (pl.cdiv(B, tb),)

    x_item = jnp.dtype(x2d.dtype).itemsize
    w_item = jnp.dtype(w1p.dtype).itemsize
    w_bytes = (in_f * h1p + h1p * h2p + h2p * outp) * w_item + (h1p + h2p + outp) * 4
    cost = pl.CostEstimate(
        flops=2 * B * (in_f * h1p + h1p * h2p + h2p * outp),
        bytes_accessed=B * in_f * x_item + B * outp * 4 + w_bytes,
        transcendentals=0,
    )

    # Per-step VMEM: double-buffered x/out tiles + resident weights + hidden acts.
    vmem_est = (2 * tb * in_f * x_item          # x tiles (double-buffered)
                + 2 * tb * outp * 4             # out tiles (double-buffered)
                + w_bytes                       # resident weights + biases
                + tb * (h1p + h2p) * 4)         # hidden activations
    vmem_limit = int(min(max(2 * vmem_est, 16 * 1024 * 1024), 48 * 1024 * 1024))

    resident = lambda i: (0, 0)  # same block every step -> stays VMEM-resident

    out_padded = pl.pallas_call(
        mlp_kernel,
        out_shape=jax.ShapeDtypeStruct((B, outp), jnp.float32),
        grid=grid,
        in_specs=[
            pl.BlockSpec((tb, in_f), lambda i: (i, 0)),   # x: batch-tiled, unpadded features
            pl.BlockSpec((in_f, h1p), resident),          # w1
            pl.BlockSpec((1, h1p), resident),             # b1
            pl.BlockSpec((h1p, h2p), resident),           # w2
            pl.BlockSpec((1, h2p), resident),             # b2
            pl.BlockSpec((h2p, outp), resident),          # w3
            pl.BlockSpec((1, outp), resident),            # b3
        ],
        out_specs=pl.BlockSpec((tb, outp), lambda i: (i, 0)),
        compiler_params=pltpu.CompilerParams(
            dimension_semantics=("parallel",),            # batch tiles across v7x TCs
            vmem_limit_bytes=vmem_limit,
        ),
        cost_estimate=cost,
    )(x2d, w1p, b1p, w2p, b2p, w3p, b3p)

    # TODO(synk): emit bf16 logits (cast in-kernel) if downstream tolerates it;
    # halves the output writeback traffic.
    return out_padded[:, :out_features]          # drop padded output lanes


def init_params(key, input_size, layer_sizes, output_size):
    """Deterministic init mimicking PyTorch nn.Linear (uniform +-1/sqrt(fan_in)).

    Weights are stored already transposed: shape [in, out]. Biases as [out].
    """
    sizes = [input_size] + list(layer_sizes) + [output_size]
    params = {}
    for i in range(len(sizes) - 1):
        fan_in, fan_out = sizes[i], sizes[i + 1]
        key, kw, kb = jax.random.split(key, 3)
        bound = 1.0 / (fan_in ** 0.5)
        params[f"w{i + 1}"] = jax.random.uniform(
            kw, (fan_in, fan_out), jnp.float32, -bound, bound)
        params[f"b{i + 1}"] = jax.random.uniform(
            kb, (fan_out,), jnp.float32, -bound, bound)
    return params


def mlp_reference(x, params):
    """Plain-JAX reference for correctness checking."""
    B = x.shape[0]
    h = x.reshape(B, -1)
    h = jnp.maximum(h @ params["w1"] + params["b1"], 0.0)
    h = jnp.maximum(h @ params["w2"] + params["b2"], 0.0)
    return h @ params["w3"] + params["b3"]


if __name__ == "__main__":
    # PyTorch module defaults: input_size=28*28, layer_sizes=[120, 84], output_size=10.
    input_size = 28 * 28
    layer_sizes = [120, 84]
    output_size = 10

    key = jax.random.PRNGKey(0)
    params = init_params(key, input_size, layer_sizes, output_size)

    # f32 weights, small batch: tb=8 tile over-extends B=2 (tail handling check).
    prepared_f32 = prepare_params(params, weight_dtype=jnp.float32)
    key, kx = jax.random.split(key)
    x = jax.random.normal(kx, (2, 1, 28, 28), jnp.float32)   # NCHW
    out = jax.block_until_ready(
        mlp_forward(x, prepared_f32, out_features=output_size))
    ref = mlp_reference(x, params)
    assert out.shape == (2, output_size), out.shape
    assert jnp.allclose(out, ref, atol=1e-5, rtol=1e-5), "f32 mismatch vs reference"

    # bf16 weights (x stays f32, f32 accumulation), multi-tile batch with ragged
    # tail: B=300, block_b=128 -> 3 grid steps, last block over-extends by 84 rows.
    prepared_bf16 = prepare_params(params, weight_dtype=jnp.bfloat16)
    key, kx2 = jax.random.split(key)
    x2 = jax.random.normal(kx2, (300, 1, 28, 28), jnp.float32)
    out2 = jax.block_until_ready(
        mlp_forward(x2, prepared_bf16, out_features=output_size, block_b=128))
    ref2 = mlp_reference(x2, params)
    assert out2.shape == (300, output_size), out2.shape
    assert jnp.allclose(out2, ref2, atol=5e-2, rtol=5e-2), "bf16 mismatch vs reference"

    print("KERNEL_OK")
</pallas_src>

<mosaic_0001>
module attributes {stable_mosaic.version = 11 : i64} {
  func.func @mlp_kernel(%arg0: i32, %arg1: memref<8x784xf32, #tpu.memory_space<vmem>>, %arg2: memref<784x128xf32, #tpu.memory_space<vmem>>, %arg3: memref<1x128xf32, #tpu.memory_space<vmem>>, %arg4: memref<128x128xf32, #tpu.memory_space<vmem>>, %arg5: memref<1x128xf32, #tpu.memory_space<vmem>>, %arg6: memref<128x128xf32, #tpu.memory_space<vmem>>, %arg7: memref<1x128xf32, #tpu.memory_space<vmem>>, %arg8: memref<8x128xf32, #tpu.memory_space<vmem>>) attributes {dimension_semantics = [#tpu.dimension_semantics<parallel>], iteration_bounds = array<i64: 1>, scalar_prefetch = 0 : i64, scratch_operands = 0 : i64, tpu.core_type = #tpu.core_type<tc>, window_params = [{transform_indices = @transform_0, window_bounds = array<i64: 8, 784>}, {pipeline_mode = #tpu.pipeline_mode<synchronous>, transform_indices = @transform_1, window_bounds = array<i64: 784, 128>}, {pipeline_mode = #tpu.pipeline_mode<synchronous>, transform_indices = @transform_2, window_bounds = array<i64: 1, 128>}, {pipeline_mode = #tpu.pipeline_mode<synchronous>, transform_indices = @transform_3, window_bounds = array<i64: 128, 128>}, {pipeline_mode = #tpu.pipeline_mode<synchronous>, transform_indices = @transform_4, window_bounds = array<i64: 1, 128>}, {pipeline_mode = #tpu.pipeline_mode<synchronous>, transform_indices = @transform_5, window_bounds = array<i64: 128, 128>}, {pipeline_mode = #tpu.pipeline_mode<synchronous>, transform_indices = @transform_6, window_bounds = array<i64: 1, 128>}, {transform_indices = @transform_7, window_bounds = array<i64: 8, 128>}]} {
    %c0 = arith.constant 0 : index
    %c0_0 = arith.constant 0 : index
    %0 = vector.load %arg1[%c0, %c0_0] : memref<8x784xf32, #tpu.memory_space<vmem>>, vector<8x784xf32>
    %c0_1 = arith.constant 0 : index
    %c0_2 = arith.constant 0 : index
    %1 = vector.load %arg2[%c0_1, %c0_2] : memref<784x128xf32, #tpu.memory_space<vmem>>, vector<784x128xf32>
    %cst = arith.constant dense<0.000000e+00> : vector<8x128xf32>
    %2 = tpu.matmul %0, %1, %cst {dimension_numbers = #tpu.dot_dimension_numbers<[1], [0], [0], [1], [0, 0, 1, 1], [], []>} : vector<8x784xf32>, vector<784x128xf32>, vector<8x128xf32> -> vector<8x128xf32>
    %c0_3 = arith.constant 0 : index
    %c0_4 = arith.constant 0 : index
    %3 = vector.load %arg3[%c0_3, %c0_4] : memref<1x128xf32, #tpu.memory_space<vmem>>, vector<1x128xf32>
    %4 = vector.broadcast %3 : vector<1x128xf32> to vector<8x128xf32>
    %5 = arith.addf %2, %4 : vector<8x128xf32>
    %cst_5 = arith.constant 0.000000e+00 : f32
    %6 = vector.broadcast %cst_5 : f32 to vector<8x128xf32>
    %7 = arith.maximumf %5, %6 : vector<8x128xf32>
    %c0_6 = arith.constant 0 : index
    %c0_7 = arith.constant 0 : index
    %8 = vector.load %arg4[%c0_6, %c0_7] : memref<128x128xf32, #tpu.memory_space<vmem>>, vector<128x128xf32>
    %cst_8 = arith.constant dense<0.000000e+00> : vector<8x128xf32>
    %9 = tpu.matmul %7, %8, %cst_8 {dimension_numbers = #tpu.dot_dimension_numbers<[1], [0], [0], [1], [0, 0, 1, 1], [], []>} : vector<8x128xf32>, vector<128x128xf32>, vector<8x128xf32> -> vector<8x128xf32>
    %c0_9 = arith.constant 0 : index
    %c0_10 = arith.constant 0 : index
    %10 = vector.load %arg5[%c0_9, %c0_10] : memref<1x128xf32, #tpu.memory_space<vmem>>, vector<1x128xf32>
    %11 = vector.broadcast %10 : vector<1x128xf32> to vector<8x128xf32>
    %12 = arith.addf %9, %11 : vector<8x128xf32>
    %cst_11 = arith.constant 0.000000e+00 : f32
    %13 = vector.broadcast %cst_11 : f32 to vector<8x128xf32>
    %14 = arith.maximumf %12, %13 : vector<8x128xf32>
    %c0_12 = arith.constant 0 : index
    %c0_13 = arith.constant 0 : index
    %15 = vector.load %arg6[%c0_12, %c0_13] : memref<128x128xf32, #tpu.memory_space<vmem>>, vector<128x128xf32>
    %cst_14 = arith.constant dense<0.000000e+00> : vector<8x128xf32>
    %16 = tpu.matmul %14, %15, %cst_14 {dimension_numbers = #tpu.dot_dimension_numbers<[1], [0], [0], [1], [0, 0, 1, 1], [], []>} : vector<8x128xf32>, vector<128x128xf32>, vector<8x128xf32> -> vector<8x128xf32>
    %c0_15 = arith.constant 0 : index
    %c0_16 = arith.constant 0 : index
    %17 = vector.load %arg7[%c0_15, %c0_16] : memref<1x128xf32, #tpu.memory_space<vmem>>, vector<1x128xf32>
    %18 = vector.broadcast %17 : vector<1x128xf32> to vector<8x128xf32>
    %19 = arith.addf %16, %18 : vector<8x128xf32>
    %c0_17 = arith.constant 0 : index
    %c0_18 = arith.constant 0 : index
    %20 = vector.load %arg8[%c0_17, %c0_18] : memref<8x128xf32, #tpu.memory_space<vmem>>, vector<8x128xf32>
    tpu.vector_store %arg8[%c0_17, %c0_18], %19 {strides = array<i32>} : memref<8x128xf32, #tpu.memory_space<vmem>>, vector<8x128xf32>,
    return
  }
  func.func @transform_0(%arg0: i32) -> (i32, i32) {
    %c0_i32 = arith.constant 0 : i32
    %c0_i32_0 = arith.constant 0 : i32
    return %arg0, %c0_i32 : i32, i32
  }
  func.func @transform_1(%arg0: i32) -> (i32, i32) {
    %c0_i32 = arith.constant 0 : i32
    %c0_i32_0 = arith.constant 0 : i32
    %c0_i32_1 = arith.constant 0 : i32
    return %c0_i32, %c0_i32_0 : i32, i32
  }
  func.func @transform_2(%arg0: i32) -> (i32, i32) {
    %c0_i32 = arith.constant 0 : i32
    %c0_i32_0 = arith.constant 0 : i32
    %c0_i32_1 = arith.constant 0 : i32
    return %c0_i32, %c0_i32_0 : i32, i32
  }
  func.func @transform_3(%arg0: i32) -> (i32, i32) {
    %c0_i32 = arith.constant 0 : i32
    %c0_i32_0 = arith.constant 0 : i32
    %c0_i32_1 = arith.constant 0 : i32
    return %c0_i32, %c0_i32_0 : i32, i32
  }
  func.func @transform_4(%arg0: i32) -> (i32, i32) {
    %c0_i32 = arith.constant 0 : i32
    %c0_i32_0 = arith.constant 0 : i32
    %c0_i32_1 = arith.constant 0 : i32
    return %c0_i32, %c0_i32_0 : i32, i32
  }
  func.func @transform_5(%arg0: i32) -> (i32, i32) {
    %c0_i32 = arith.constant 0 : i32
    %c0_i32_0 = arith.constant 0 : i32
    %c0_i32_1 = arith.constant 0 : i32
    return %c0_i32, %c0_i32_0 : i32, i32
  }
  func.func @transform_6(%arg0: i32) -> (i32, i32) {
    %c0_i32 = arith.constant 0 : i32
    %c0_i32_0 = arith.constant 0 : i32
    %c0_i32_1 = arith.constant 0 : i32
    return %c0_i32, %c0_i32_0 : i32, i32
  }
  func.func @transform_7(%arg0: i32) -> (i32, i32) {
    %c0_i32 = arith.constant 0 : i32
    %c0_i32_0 = arith.constant 0 : i32
    return %arg0, %c0_i32 : i32, i32
  }
}

</mosaic_0001>

<bundles_post_ra>
// kernel: mlp_forward.1
= control target key start
LH: loop header
LB: loop body
LE: loop exit
PB: predicated region body
PF: predicated region fallthrough
CT: control target
= control target key end

     0   :  { %12 = vsyncpa [#allocation3], 0  ;;  %s677_s0 = inlined_call_operand.vmem [shape: f32[2,784], index: 0, kind: input, shape index: {}]   ;;  %s678_s1 = inlined_call_operand.hbm [shape: f32[784,128], index: 1, kind: input, shape index: {}]   ;;  %s679_s2 = inlined_call_operand.vmem [shape: f32[1,128], index: 2, kind: input, shape index: {}]   ;;  %s680_s3 = inlined_call_operand.vmem [shape: f32[128,128], index: 3, kind: input, shape index: {}]   ;;  %s681_s4 = inlined_call_operand.vmem [shape: f32[1,128], index: 4, kind: input, shape index: {}]   ;;  %s682_s5 = inlined_call_operand.hbm [shape: f32[128,128], index: 5, kind: input, shape index: {}]   ;;  %s683_s6 = inlined_call_operand.vmem [shape: f32[1,128], index: 6, kind: input, shape index: {}]   ;;  %s684_s7 = inlined_call_operand.hbm [shape: f32[2,128], index: 7, kind: output, shape index: {}]  }
   0x1   :  { %13 = vsyncpa [#allocation6], 0 }
   0x2   :  { %14 = vsyncpa [#allocation4], 0  ;;  %s21_s26 = sshll.u32 %s678_s1, 4  ;;  %s540_s27 = smov [#allocation2]   ;;  %s22_s26 = int_to_ptr.hbm [resolvable:$true] %s21_s26 }
   0x3   :  { %s23_s28 = sshll.u32 %s540_s27, 4  ;;  %s40_s8 = sshll.u32 %s682_s5, 4  ;;  %s24_s28 = int_to_ptr.vmem [resolvable:$true] %s23_s28  ;;  %s41_s8 = int_to_ptr.hbm [resolvable:$true] %s40_s8 }
   0x4   :  { %s541_s9 = smov 128   ;;  %s542_s10 = smov 8  }
   0x5   :  { %29 = dma.hbm_to_vmem [thread:$0]  %s22_s26, 12544, %s24_s28, [#allocation3], %s541_s9, %s541_s9, %s542_s10  }
   0x6   :  { %s543_s11 = smov [#allocation5]  }
   0x7   :  { %s42_s12 = sshll.u32 %s543_s11, 4  ;;  %s43_s12 = int_to_ptr.vmem [resolvable:$true] %s42_s12 }
   0x8   :  { %48 = dma.hbm_to_vmem [thread:$0]  %s41_s8, 2048, %s43_s12, [#allocation6], %s541_s9, %s541_s9, %s542_s10  }
   0x9   :  { %534 = dma.done.wait [#allocation3], 12544  }
   0xa   :  { %535 = vsyncadd [#allocation3], 4294954752 }
   0xb   :  { %536 = dma.done.wait [#allocation6], 2048  }
   0xc   :  { %537 = vsyncadd [#allocation6], 4294965248  ;;  %v82_v0 = vld [vmem:[#allocation2 + $0x78] sm:$0xff]  ;;  %v81_v1 = vld [vmem:[#allocation2 + $0x70] sm:$0xff]  ;;  %vm205_vm0 = vcmask 130048  }
   0xd   :  { %v98_v2 = vld [vmem:[#allocation2 + $0xf8] sm:$0xff]  ;;  %208 = vmatpush.msra.mxu0 %v82_v0  ;;  %v97_v3 = vld [vmem:[#allocation2 + $0xf0] sm:$0xff]  ;;  %v80_v4 = vld [vmem:[#allocation2 + $0x68] sm:$0xff] }
   0xe   :  { %228 = vmatpush.msra.mxu1 %v98_v2  ;;  %v96_v5 = vld [vmem:[#allocation2 + $0xe8] sm:$0xff]  ;;  %v79_v6 = vld [vmem:[#allocation2 + $0x60] sm:$0xff]  ;;  %v78_v8 = vld [vmem:[#allocation2 + $0x58] sm:$0xff] }
   0xf   :  { %209 = vmatpush.msra.mxu0 %v81_v1  ;;  %v95_v7 = vld [vmem:[#allocation2 + $0xe0] sm:$0xff]  ;;  %v94_v9 = vld [vmem:[#allocation2 + $0xd8] sm:$0xff]  ;;  %v77_v10 = vld [vmem:[#allocation2 + $0x50] sm:$0xff] }
  0x10   :  { %229 = vmatpush.msra.mxu1 %v97_v3  ;;  %v114_v11 = vld [vmem:[#allocation2 + $0x178] sm:$0xff]  ;;  %v93_v12 = vld [vmem:[#allocation2 + $0xd0] sm:$0xff]  ;;  %v112_v15 = vld [vmem:[#allocation2 + $0x168] sm:$0xff] }
  0x11   :  { %210 = vmatpush.msra.mxu0 %v80_v4  ;;  %248 = vmatpush.msra.mxu2 %v114_v11  ;;  %v113_v13 = vld [vmem:[#allocation2 + $0x170] sm:$0xff]  ;;  %v130_v14 = vld [vmem:[#allocation2 + $0x1f8] sm:$0xff]  ;;  %v76_v17 = vld [vmem:[#allocation2 + $0x48] sm:$0xff] }
  0x12   :  { %230 = vmatpush.msra.mxu1 %v96_v5  ;;  %v129_v16 = vld [vmem:[#allocation2 + $0x1f0] sm:$0xff]  ;;  %v92_v18 = vld [vmem:[#allocation2 + $0xc8] sm:$0xff]  ;;  %268 = vmatpush.msra.mxu3 %v130_v14  ;;  %v111_v19 = vld [vmem:[#allocation2 + $0x160] sm:$0xff] }
  0x13   :  { %211 = vmatpush.msra.mxu0 %v79_v6  ;;  %249 = vmatpush.msra.mxu2 %v113_v13  ;;  %v128_v20 = vld [vmem:[#allocation2 + $0x1e8] sm:$0xff]  ;;  %v75_v21 = vld [vmem:[#allocation2 + $0x40] sm:$0xff]  ;;  %v110_v23 = vld [vmem:[#allocation2 + $0x158] sm:$0xff] }
  0x14   :  { %231 = vmatpush.msra.mxu1 %v95_v7  ;;  %v91_v22 = vld [vmem:[#allocation2 + $0xc0] sm:$0xff]  ;;  %269 = vmatpush.msra.mxu3 %v129_v16  ;;  %v74_v25 = vld [vmem:[#allocation2 + $0x38] sm:$0xff]  ;;  %v109_v27 = vld [vmem:[#allocation2 + $0x150] sm:$0xff] }
  0x15   :  { %212 = vmatpush.msra.mxu0 %v78_v8  ;;  %250 = vmatpush.msra.mxu2 %v112_v15  ;;  %v127_v24 = vld [vmem:[#allocation2 + $0x1e0] sm:$0xff]  ;;  %v90_v26 = vld [vmem:[#allocation2 + $0xb8] sm:$0xff]  ;;  %v73_v29 = vld [vmem:[#allocation2 + $0x30] sm:$0xff] }
  0x16   :  { %232 = vmatpush.msra.mxu1 %v94_v9  ;;  %270 = vmatpush.msra.mxu3 %v128_v20  ;;  %v126_v28 = vld [vmem:[#allocation2 + $0x1d8] sm:$0xff]  ;;  %v89_v30 = vld [vmem:[#allocation2 + $0xb0] sm:$0xff]  ;;  %v108_v31 = vld [vmem:[#allocation2 + $0x148] sm:$0xff] }
  0x17   :  { %213 = vmatpush.msra.mxu0 %v77_v10  ;;  %251 = vmatpush.msra.mxu2 %v111_v19  ;;  %v125_v32 = vld [vmem:[#allocation2 + $0x1d0] sm:$0xff]  ;;  %v72_v33 = vld [vmem:[#allocation2 + $0x28] sm:$0xff]  ;;  %v107_v35 = vld [vmem:[#allocation2 + $0x140] sm:$0xff] }
  0x18   :  { %233 = vmatpush.msra.mxu1 %v93_v12  ;;  %271 = vmatpush.msra.mxu3 %v127_v24  ;;  %v88_v34 = vld [vmem:[#allocation2 + $0xa8] sm:$0xff]  ;;  %v71_v37 = vld [vmem:[#allocation2 + $0x20] sm:$0xff]  ;;  %v106_v39 = vld [vmem:[#allocation2 + $0x138] sm:$0xff] }
  0x19   :  { %214 = vmatpush.msra.mxu0 %v76_v17  ;;  %252 = vmatpush.msra.mxu2 %v110_v23  ;;  %v124_v36 = vld [vmem:[#allocation2 + $0x1c8] sm:$0xff]  ;;  %v87_v38 = vld [vmem:[#allocation2 + $0xa0] sm:$0xff]  ;;  %v70_v41 = vld [vmem:[#allocation2 + $0x18] sm:$0xff] }
  0x1a   :  { %234 = vmatpush.msra.mxu1 %v92_v18  ;;  %272 = vmatpush.msra.mxu3 %v126_v28  ;;  %v123_v40 = vld [vmem:[#allocation2 + $0x1c0] sm:$0xff]  ;;  %v86_v42 = vld [vmem:[#allocation2 + $0x98] sm:$0xff]  ;;  %v105_v43 = vld [vmem:[#allocation2 + $0x130] sm:$0xff] }
  0x1b   :  { %215 = vmatpush.msra.mxu0 %v75_v21  ;;  %253 = vmatpush.msra.mxu2 %v109_v27  ;;  %v122_v44 = vld [vmem:[#allocation2 + $0x1b8] sm:$0xff]  ;;  %v69_v45 = vld [vmem:[#allocation2 + $0x10] sm:$0xff]  ;;  %v104_v47 = vld [vmem:[#allocation2 + $0x128] sm:$0xff] }
  0x1c   :  { %235 = vmatpush.msra.mxu1 %v91_v22  ;;  %273 = vmatpush.msra.mxu3 %v125_v32  ;;  %v85_v46 = vld [vmem:[#allocation2 + $0x90] sm:$0xff]  ;;  %v68_v49 = vld [vmem:[#allocation2 + $0x8] sm:$0xff]  ;;  %v67_v50 = vld [vmem:[#allocation2] sm:$0xff] }
  0x1d   :  { %216 = vmatpush.msra.mxu0 %v74_v25  ;;  %254 = vmatpush.msra.mxu2 %v108_v31  ;;  %v121_v48 = vld [vmem:[#allocation2 + $0x1b0] sm:$0xff]  ;;  %v84_v51 = vld [vmem:[#allocation2 + $0x88] sm:$0xff]  ;;  %v83_v52 = vld [vmem:[#allocation2 + $0x80] sm:$0xff] }
  0x1e   :  { %236 = vmatpush.msra.mxu1 %v90_v26  ;;  %274 = vmatpush.msra.mxu3 %v124_v36  ;;  %v103_v53 = vld [vmem:[#allocation2 + $0x120] sm:$0xff]  ;;  %v120_v54 = vld [vmem:[#allocation2 + $0x1a8] sm:$0xff]  ;;  %v59_v55 = vld [vmem:[%s677_s0] sm:$0xff] }
  0x1f   :  { %217 = vmatpush.msra.mxu0 %v73_v29  ;;  %255 = vmatpush.msra.mxu2 %v107_v35  ;;  %v61_v56 = vld [vmem:[%s677_s0 + $0xe] sm:$0xff]  ;;  %v63_v57 = vld [vmem:[%s677_s0 + $0x1c] sm:$0xff]  ;;  %177 = vst [vmem:[#allocation1] ss:$4 sm:$0xff] %v59_v55  ;;  %v60_v5 = vld [vmem:[%s677_s0 + $0x8] sm:$0x3f] }
  0x20   :  { %237 = vmatpush.msra.mxu1 %v89_v30  ;;  %275 = vmatpush.msra.mxu3 %v123_v40  ;;  %v146_v58 = vld [vmem:[#allocation2 + $0x278] sm:$0xff]  ;;  %v65_v60 = vld [vmem:[%s677_s0 + $0x2a] sm:$0xff]  ;;  %179 = vst [vmem:[#allocation1 + $0x1] ss:$4 sm:$0xff] %v61_v56  ;;  %v145_v63 = vld [vmem:[#allocation2 + $0x270] sm:$0xff] }
  0x21   :  { %218 = vmatpush.msra.mxu0 %v72_v33  ;;  %256 = vmatpush.msra.mxu2 %v106_v39  ;;  %v162_v59 = vld [vmem:[#allocation2 + $0x2f8] sm:$0xff]  ;;  %v119_v62 = vld [vmem:[#allocation2 + $0x1a0] sm:$0xff]  ;;  %v144_v0 = vld [vmem:[#allocation2 + $0x268] sm:$0xff]  ;;  %181 = vst [vmem:[#allocation1 + $0x2] ss:$4 sm:$0xff] %v63_v57 }
  0x22   :  { %238 = vmatpush.msra.mxu1 %v88_v34  ;;  %276 = vmatpush.msra.mxu3 %v122_v44  ;;  %v102_v61 = vld [vmem:[#allocation2 + $0x118] sm:$0xff]  ;;  %v161_v1 = vld [vmem:[#allocation2 + $0x2f0] sm:$0xff]  ;;  %v160_v2 = vld [vmem:[#allocation2 + $0x2e8] sm:$0xff]  ;;  %183 = vst [vmem:[#allocation1 + $0x3] ss:$4 sm:$0xff] %v65_v60 }
  0x23   :  { %219 = vmatpush.msra.mxu0 %v71_v37  ;;  %257 = vmatpush.msra.mxu2 %v105_v43  ;;  %v101_v3 = vld [vmem:[#allocation2 + $0x110] sm:$0xff]  ;;  %v118_v4 = vld [vmem:[#allocation2 + $0x198] sm:$0xff]  ;;  %v100_v8 = vld [vmem:[#allocation2 + $0x108] sm:$0xff]  ;;  %185 = vst [vmem:[#allocation1 + $0x20] ss:$4 sm:$0xff] %v60_v5 }
  0x24   :  { %239 = vmatpush.msra.mxu1 %v87_v38  ;;  %277 = vmatpush.msra.mxu3 %v121_v48  ;;  %v62_v6 = vld [vmem:[%s677_s0 + $0x16] sm:$0x3f]  ;;  %v64_v7 = vld [vmem:[%s677_s0 + $0x24] sm:$0x3f] }
  0x25   :  { %220 = vmatpush.msra.mxu0 %v70_v41  ;;  %258 = vmatpush.msra.mxu2 %v104_v47  ;;  %v117_v9 = vld [vmem:[#allocation2 + $0x190] sm:$0xff]  ;;  %v66_v10 = vld [vmem:[%s677_s0 + $0x32] sm:$0x3f]  ;;  %v143_v11 = vld [vmem:[#allocation2 + $0x260] sm:$0xff]  ;;  %187 = vst [vmem:[#allocation1 + $0x21] ss:$4 sm:$0xff] %v62_v6 }
  0x26   :  { %240 = vmatpush.msra.mxu1 %v86_v42  ;;  %278 = vmatpush.msra.mxu3 %v120_v54  ;;  %v159_v12 = vld [vmem:[#allocation2 + $0x2e0] sm:$0xff]  ;;  %v116_v14 = vld [vmem:[#allocation2 + $0x188] sm:$0xff]  ;;  %189 = vst [vmem:[#allocation1 + $0x22] ss:$4 sm:$0xff] %v64_v7  ;;  %v142_v15 = vld [vmem:[#allocation2 + $0x258] sm:$0xff] }
  0x27   :  { %221 = vmatpush.msra.mxu0 %v69_v45  ;;  %259 = vmatpush.msra.mxu2 %v103_v53  ;;  %v99_v13 = vld [vmem:[#allocation2 + $0x100] sm:$0xff]  ;;  %v158_v16 = vld [vmem:[#allocation2 + $0x2d8] sm:$0xff]  ;;  %191 = vst [vmem:[#allocation1 + $0x23] ss:$4 sm:$0xff] %v66_v10  ;;  %v141_v18 = vld [vmem:[#allocation2 + $0x250] sm:$0xff] }
  0x28   :  { %241 = vmatpush.msra.mxu1 %v85_v46  ;;  %279 = vmatpush.msra.mxu3 %v119_v62  ;;  %v115_v17 = vld [vmem:[#allocation2 + $0x180] sm:$0xff]  ;;  %v157_v19 = vld [vmem:[#allocation2 + $0x2d0] sm:$0xff]  ;;  %v164_v21 = vld [vmem:[#allocation2 + $0x308] sm:$0xff] }
  0x29   :  { %222 = vmatpush.msra.mxu0 %v68_v49  ;;  %260 = vmatpush.msra.mxu2 %v102_v61  ;;  %v194_v20 = vld.sshfl [vmem:[#allocation1 + $0x10] sm:$0xff pattern:$0x73625140]  ;;  %v192_v22 = vld.sshfl [vmem:[#allocation1] sm:$0xff pattern:$0x73625140] }
  0x2a   :  { %242 = vmatpush.msra.mxu1 %v84_v51  ;;  %280 = vmatpush.msra.mxu3 %v118_v4  ;;  %v140_v23 = vld [vmem:[#allocation2 + $0x248] sm:$0xff]  ;;  %v195_v25 = vld.sshfl [vmem:[#allocation1 + $0x18] sm:$0xff pattern:$0x73625140]  ;;  %v139_v27 = vld [vmem:[#allocation2 + $0x240] sm:$0xff] }
  0x2b   :  { %223 = vmatpush.msra.mxu0 %v67_v50  ;;  %261 = vmatpush.msra.mxu2 %v101_v3  ;;  %v156_v24 = vld [vmem:[#allocation2 + $0x2c8] sm:$0xff]  ;;  %v193_v26 = vld.sshfl [vmem:[#allocation1 + $0x8] sm:$0xff pattern:$0x73625140]  ;;  %v364_v30 = vld [vmem:[%s680_s3 + $0x78] sm:$0xff] }
  0x2c   :  { %243 = vmatpush.msra.mxu1 %v83_v52  ;;  %281 = vmatpush.msra.mxu3 %v117_v9  ;;  %v155_v28 = vld [vmem:[#allocation2 + $0x2c0] sm:$0xff]  ;;  %v138_v31 = vld [vmem:[#allocation2 + $0x238] sm:$0xff]  ;;  %v363_v34 = vld [vmem:[%s680_s3 + $0x70] sm:$0xff] }
  0x2d   :  { %288 = vmatpush.msrb.mxu0 %v146_v58  ;;  %262 = vmatpush.msra.mxu2 %v100_v8  ;;  %v163_v29 = vld [vmem:[#allocation2 + $0x300] sm:$0xff]  ;;  %v154_v32 = vld [vmem:[#allocation2 + $0x2b8] sm:$0xff]  ;;  %v137_v35 = vld [vmem:[#allocation2 + $0x230] sm:$0xff] }
  0x2e   :  { %308 = vmatpush.msrb.mxu1 %v162_v59  ;;  %282 = vmatpush.msra.mxu3 %v116_v14  ;;  %v198_v33 = vld.sshfl [vmem:[#allocation1 + $0x30] sm:$0xff pattern:$0x73625140]  ;;  %v153_v36 = vld [vmem:[#allocation2 + $0x2b0] sm:$0xff]  ;;  %v362_v37 = vld [vmem:[%s680_s3 + $0x68] sm:$0xff] }
  0x2f   :  { %289 = vmatpush.msrb.mxu0 %v145_v63  ;;  %263 = vmatpush.msra.mxu2 %v99_v13  ;;  %v136_v38 = vld [vmem:[#allocation2 + $0x228] sm:$0xff]  ;;  %v361_v40 = vld [vmem:[%s680_s3 + $0x60] sm:$0xff]  ;;  %v135_v41 = vld [vmem:[#allocation2 + $0x220] sm:$0xff] }
  0x30   :  { %309 = vmatpush.msrb.mxu1 %v161_v1  ;;  %264 = vmatmul.f32.vlgmr.msra.gmra.mxu2 %v194_v20  ;;  %v152_v39 = vld [vmem:[#allocation2 + $0x2a8] sm:$0xff]  ;;  %v151_v42 = vld [vmem:[#allocation2 + $0x2a0] sm:$0xff]  ;;  %v360_v43 = vld [vmem:[%s680_s3 + $0x58] sm:$0xff] }
  0x31   :  { %290 = vmatpush.msrb.mxu0 %v144_v0  ;;  %283 = vmatpush.msra.mxu3 %v115_v17  ;;  %v134_v44 = vld [vmem:[#allocation2 + $0x218] sm:$0xff]  ;;  %v359_v46 = vld [vmem:[%s680_s3 + $0x50] sm:$0xff]  ;;  %v133_v47 = vld [vmem:[#allocation2 + $0x210] sm:$0xff] }
  0x32   :  { %310 = vmatpush.msrb.mxu1 %v160_v2  ;;  %342 = vmatpush.msrb.mxu2 %v164_v21  ;;  %v150_v45 = vld [vmem:[#allocation2 + $0x298] sm:$0xff]  ;;  %v149_v48 = vld [vmem:[#allocation2 + $0x290] sm:$0xff]  ;;  %v358_v49 = vld [vmem:[%s680_s3 + $0x48] sm:$0xff] }
  0x33   :  { %291 = vmatpush.msrb.mxu0 %v143_v11  ;;  %284 = vmatmul.f32.vlgmr.msra.gmra.mxu3 %v195_v25  ;;  %v132_v50 = vld [vmem:[#allocation2 + $0x208] sm:$0xff]  ;;  %v131_v52 = vld [vmem:[#allocation2 + $0x200] sm:$0xff]  ;;  %v196_v54 = vld.sshfl [vmem:[#allocation1 + $0x20] sm:$0xff pattern:$0x73625140] }
  0x34   :  { %311 = vmatpush.msrb.mxu1 %v159_v12  ;;  %224 = vmatmul.f32.vlgmr.msra.gmra.mxu0 %v192_v22  ;;  %v148_v51 = vld [vmem:[#allocation2 + $0x288] sm:$0xff]  ;;  %v147_v53 = vld [vmem:[#allocation2 + $0x280] sm:$0xff]  ;;  %v357_v56 = vld [vmem:[%s680_s3 + $0x40] sm:$0xff] }
  0x35   :  { %292 = vmatpush.msrb.mxu0 %v142_v15  ;;  %244 = vmatmul.f32.vlgmr.msra.gmra.mxu1 %v193_v26  ;;  %v197_v55 = vld.sshfl [vmem:[#allocation1 + $0x28] sm:$0xff pattern:$0x73625140]  ;;  %v356_v57 = vld [vmem:[%s680_s3 + $0x38] sm:$0xff]  ;;  %v355_v58 = vld [vmem:[%s680_s3 + $0x30] sm:$0xff] }
  0x36   :  { %312 = vmatpush.msrb.mxu1 %v158_v16  ;;  %343 = vmatpush.msrb.mxu2 %v163_v29  ;;  %v354_v59 = vld [vmem:[%s680_s3 + $0x28] sm:$0xff]  ;;  %v353_v60 = vld [vmem:[%s680_s3 + $0x20] sm:$0xff]  ;;  %v352_v61 = vld [vmem:[%s680_s3 + $0x18] sm:$0xff] }
  0x37   :  { %293 = vmatpush.msrb.mxu0 %v141_v18  ;;  %369 = vmatpush.msrb.mxu3 %v364_v30  ;;  %v351_v62 = vld [vmem:[%s680_s3 + $0x10] sm:$0xff]  ;;  %v350_v63 = vld [vmem:[%s680_s3 + $0x8] sm:$0xff]  ;;  %v349_v0 = vld [vmem:[%s680_s3] sm:$0xff] }
  0x38   :  { %313 = vmatpush.msrb.mxu1 %v157_v19  ;;  %451 = vmatmul.msk.f32.vlgmr.msrb.gmra.mxu2 %vm205_vm0, %v198_v33  ;;  %v405_v1 = vld [vmem:[#allocation5 + $0x78] sm:$0xff]  ;;  %v404_v2 = vld [vmem:[#allocation5 + $0x70] sm:$0xff]  ;;  %v403_v3 = vld [vmem:[#allocation5 + $0x68] sm:$0xff] }
  0x39   :  { %294 = vmatpush.msrb.mxu0 %v140_v23  ;;  %370 = vmatpush.msrb.mxu3 %v363_v34  ;;  %v459_v4 = vld [vmem:[%s679_s2] ss:$0 sm:$0xff]  ;;  %v402_v5 = vld [vmem:[#allocation5 + $0x60] sm:$0xff]  ;;  %v401_v7 = vld [vmem:[#allocation5 + $0x58] sm:$0xff] }
  0x3a   :  { %314 = vmatpush.msrb.mxu1 %v156_v24  ;;  %410 = vmatpush.msra.mxu2 %v405_v1  ;;  %v400_v9 = vld [vmem:[#allocation5 + $0x50] sm:$0xff]  ;;  %v399_v11 = vld [vmem:[#allocation5 + $0x48] sm:$0xff]  ;;  %v398_v13 = vld [vmem:[#allocation5 + $0x40] sm:$0xff] }
  0x3b   :  { %295 = vmatpush.msrb.mxu0 %v139_v27  ;;  %371 = vmatpush.msrb.mxu3 %v362_v37  ;;  %v397_v15 = vld [vmem:[#allocation5 + $0x38] sm:$0xff]  ;;  %v396_v17 = vld [vmem:[#allocation5 + $0x30] sm:$0xff]  ;;  %v395_v19 = vld [vmem:[#allocation5 + $0x28] sm:$0xff] }
  0x3c   :  { %315 = vmatpush.msrb.mxu1 %v155_v28  ;;  %411 = vmatpush.msra.mxu2 %v404_v2  ;;  %v394_v21 = vld [vmem:[#allocation5 + $0x20] sm:$0xff]  ;;  %v393_v22 = vld [vmem:[#allocation5 + $0x18] sm:$0xff]  ;;  %v392_v30 = vld [vmem:[#allocation5 + $0x10] sm:$0xff] }
  0x3d   :  { %296 = vmatpush.msrb.mxu0 %v138_v31  ;;  %372 = vmatpush.msrb.mxu3 %v361_v40  ;;  %v391_v31 = vld [vmem:[#allocation5 + $0x8] sm:$0xff] }
  0x3e   :  { %316 = vmatpush.msrb.mxu1 %v154_v32  ;;  %412 = vmatpush.msra.mxu2 %v403_v3  ;;  %v390_v32 = vld [vmem:[#allocation5] sm:$0xff]  ;;  %v460_v33 = vld [vmem:[%s681_s4] ss:$0 sm:$0xff] }
  0x3f   :  { %297 = vmatpush.msrb.mxu0 %v137_v35  ;;  %373 = vmatpush.msrb.mxu3 %v360_v43  ;;  %v461_v37 = vld [vmem:[%s683_s6] ss:$0 sm:$0xff] }
  0x40   :  { %317 = vmatpush.msrb.mxu1 %v153_v36  ;;  %413 = vmatpush.msra.mxu2 %v402_v5 }
  0x41   :  { %298 = vmatpush.msrb.mxu0 %v136_v38  ;;  %374 = vmatpush.msrb.mxu3 %v359_v46 }
  0x42   :  { %318 = vmatpush.msrb.mxu1 %v152_v39  ;;  %414 = vmatpush.msra.mxu2 %v401_v7 }
  0x43   :  { %299 = vmatpush.msrb.mxu0 %v135_v41  ;;  %375 = vmatpush.msrb.mxu3 %v358_v49 }
  0x44   :  { %319 = vmatpush.msrb.mxu1 %v151_v42  ;;  %415 = vmatpush.msra.mxu2 %v400_v9 }
  0x45   :  { %300 = vmatpush.msrb.mxu0 %v134_v44  ;;  %376 = vmatpush.msrb.mxu3 %v357_v56 }
  0x46   :  { %320 = vmatpush.msrb.mxu1 %v150_v45  ;;  %416 = vmatpush.msra.mxu2 %v399_v11 }
  0x47   :  { %301 = vmatpush.msrb.mxu0 %v133_v47  ;;  %377 = vmatpush.msrb.mxu3 %v356_v57 }
  0x48   :  { %321 = vmatpush.msrb.mxu1 %v149_v48  ;;  %417 = vmatpush.msra.mxu2 %v398_v13 }
  0x49   :  { %302 = vmatpush.msrb.mxu0 %v132_v50  ;;  %378 = vmatpush.msrb.mxu3 %v355_v58 }
  0x4a   :  { %322 = vmatpush.msrb.mxu1 %v148_v51  ;;  %418 = vmatpush.msra.mxu2 %v397_v15 }
  0x4b   :  { %303 = vmatpush.msrb.mxu0 %v131_v52  ;;  %379 = vmatpush.msrb.mxu3 %v354_v59 }
  0x4c   :  { %323 = vmatpush.msrb.mxu1 %v147_v53  ;;  %304 = vmatmul.f32.vlgmr.msrb.gmra.mxu0 %v196_v54 }
  0x4d   :  { %324 = vmatmul.f32.vlgmr.msrb.gmra.mxu1 %v197_v55  ;;  %380 = vmatpush.msrb.mxu3 %v353_v60 }
  0x4e   :  { %419 = vmatpush.msra.mxu2 %v396_v17 }
  0x4f   :  { %381 = vmatpush.msrb.mxu3 %v352_v61 }
  0x50   :  { %420 = vmatpush.msra.mxu2 %v395_v19 }
  0x51   :  { %382 = vmatpush.msrb.mxu3 %v351_v62 }
  0x52   :  { %421 = vmatpush.msra.mxu2 %v394_v21 }
  0x53   :  { %383 = vmatpush.msrb.mxu3 %v350_v63 }
  0x54   :  { %422 = vmatpush.msra.mxu2 %v393_v22 }
  0x55   :  { %384 = vmatpush.msrb.mxu3 %v349_v0 }
  0x56   :  { %423 = vmatpush.msra.mxu2 %v392_v30 }
  0x58   :  { %424 = vmatpush.msra.mxu2 %v391_v31 }
  0x5a   :  { %425 = vmatpush.msra.mxu2 %v390_v32 }
  0xb1   :  { %v225_v6 = vpop.f32.mrf.mxu0 }
  0xb2   :  { %v226_v8 = vadd.f32 %v459_v4, %v225_v6  ;;  %v245_v10 = vpop.f32.mrf.mxu1 }
  0xb3   :  { %v265_v14 = vpop.f32.mrf.mxu2 }
  0xb4   :  { %v246_v12 = vadd.f32 %v245_v10, %v226_v8 }
  0xb6   :  { %v266_v16 = vadd.f32 %v265_v14, %v246_v12  ;;  %v285_v18 = vpop.f32.mrf.mxu3 }
  0xb8   :  { %v286_v20 = vadd.f32 %v285_v18, %v266_v16 }
  0xbb   :  { %v345_v26 = vpop.f32.mrf.mxu2 }
  0xc9   :  { %v305_v23 = vpop.f32.mrf.mxu0 }
  0xca   :  { %v325_v24 = vpop.f32.mrf.mxu1  ;;  %v306_v25 = vadd.f32 %v305_v23, %v286_v20 }
  0xcc   :  { %v326_v27 = vadd.f32 %v325_v24, %v306_v25 }
  0xce   :  { %v346_v28 = vadd.f32 %v345_v26, %v326_v27 }
  0xd0   :  { %v348_v29 = vmax.f32 %v346_v28, 0.0 }
  0xd2   :  { %385 = vmatmul.f32.vlgmr.msrb.gmra.mxu3 %v348_v29 }
 0x155   :  { %v386_v34 = vpop.f32.mrf.mxu3 }
 0x156   :  { %v387_v35 = vadd.f32 %v460_v33, %v386_v34 }
 0x158   :  { %v389_v36 = vmax.f32 %v387_v35, 0.0 }
 0x15a   :  { %426 = vmatmul.f32.vlgmr.msra.gmra.mxu2 %v389_v36 }
 0x1dd   :  { %v427_v38 = vpop.f32.mrf.mxu2 }
 0x1de   :  { %v428_v39 = vadd.f32 %v461_v37, %v427_v38 }
 0x1e0   :  { %430 = vst [vmem:[#allocation7] sm:$0xff] %v428_v39 }
 0x1e1   :  { %434 = vsyncadd [#allocation4], 96  ;;  %s437_s13 = sshll.u32 %s684_s7, 4  ;;  %s544_s14 = smov [#allocation7]   ;;  %s438_s13 = int_to_ptr.hbm [resolvable:$true] %s437_s13 }
 0x1e2   :  { %s435_s15 = sshll.u32 %s544_s14, 4  ;;  %s545_s4 = smov 32   ;;  %s436_s15 = int_to_ptr.vmem [resolvable:$true] %s435_s15 }
 0x1e3   :  { %s546_s16 = smov 2  }
 0x1e4   :  { %443 = dma.vmem_to_hbm [thread:$0]  %s436_s15, 32, %s438_s13, [#allocation4], %s545_s4, %s545_s4, %s546_s16  }
 0x1e5   :  { %538 = dma.done.wait [#allocation4], 128  }
 0x1e6   :  { %539 = vsyncadd [#allocation4], 4294967168 }
 0x1e7   :  { %448 = vsyncpa [#allocation3], 1 }
 0x1e8   :  { %449 = vsyncpa [#allocation6], 1 }
 0x1e9   :  { %450 = vsyncpa [#allocation4], 1 }

</bundles_post_ra>
